<compile_context>
chip_gen: v5e
topology: v5e:2x2
jax: 0.10.0
libtpu: 0.0.40
codegen_flags: <defaults>
</compile_context>

<pallas_src>
import numpy as np
import jax
import jax.numpy as jnp
from jax.experimental import pallas as pl
from jax.experimental.pallas import tpu as pltpu


def lstm_kernel(x_ref, wih_ref, whh_ref, b_ref, wfc_ref, bfc_ref, out_ref, gx_ref):
    # x_ref:   [B, T, D]   batch_first, exactly as handed to the module
    # wih_ref: [D, 4H]
    # whh_ref: [H, 4H]     (PyTorch w_hh transposed; no zero padding needed)
    # b_ref:   [1, 4H]     b_ih + b_hh, PyTorch gate order (i, f, g, o)
    # wfc_ref: [H, O]
    # bfc_ref: [1, O]
    # out_ref: [B, O]
    # gx_ref:  [B, T, 4H]  VMEM scratch holding the hoisted input projection
    B, T, D = x_ref.shape
    H, G = whh_ref.shape          # G = 4H

    whh = whh_ref[...]            # [H, 4H] kept resident in vregs across the recurrence
    bias = b_ref[...]             # [1, 4H]

    # Hoisted input projection (+ bias) for all time steps: off the serial chain.
    # One small MXU call per batch row-block; results parked in VMEM scratch so the
    # unrolled recurrence does aligned loads instead of keeping gx live in vregs.
    for b in range(B):
        gx_ref[b] = (
            jnp.dot(x_ref[b], wih_ref[...], preferred_element_type=jnp.float32)
            + bias
        )  # [T, 4H]

    # Recurrent state: h carries only the meaningful H lanes (it is the matmul LHS);
    # c stays at full gate width 4H — lanes >= H hold bounded junk that is never read.
    h = jnp.zeros((B, H), jnp.float32)
    c = jnp.zeros((B, G), jnp.float32)

    # Fully unrolled recurrence (T is a compile-time constant, indices are static).
    for t in range(T):
        gates = gx_ref[:, t, :] + jnp.dot(h, whh, preferred_element_type=jnp.float32)
        # sigmoid via tanh identity: one EUP push instead of exp + reciprocal on the
        # serial chain.  Gate blocks along lanes: [ i | f | g | o ].
        s = 0.5 * (jnp.tanh(0.5 * gates) + 1.0)   # valid for blocks i, f, o
        th = jnp.tanh(gates)                       # valid for block g
        i_g = s                                    # i already in lanes [0, H)
        f_g = pltpu.roll(s, shift=3 * H, axis=1)   # f block -> lanes [0, H)
        g_g = pltpu.roll(th, shift=2 * H, axis=1)  # g block -> lanes [0, H)
        o_g = pltpu.roll(s, shift=1 * H, axis=1)   # o block -> lanes [0, H)
        c = f_g * c + i_g * g_g                    # lanes >= H: bounded junk, unused
        h = (o_g * jnp.tanh(c))[:, :H]             # narrow back to the real H lanes

    # activation_fn (ReLU) on the last-step LSTM output, then the FC head.
    act = jnp.maximum(h, 0.0)
    out_ref[...] = (
        jnp.dot(act, wfc_ref[...], preferred_element_type=jnp.float32) + bfc_ref[...]
    )


def pack_params(w_ih, w_hh, b_ih, b_hh, w_fc, b_fc):
    """One-time repack of PyTorch-layout weights into the kernel layout."""
    H = w_hh.shape[1]
    G = 4 * H
    O = w_fc.shape[0]
    wih_t = jnp.transpose(w_ih).astype(jnp.float32)       # [D, 4H]
    whh_t = jnp.transpose(w_hh).astype(jnp.float32)       # [H, 4H]
    b_comb = (b_ih + b_hh).reshape(1, G).astype(jnp.float32)  # [1, 4H]
    wfc_t = jnp.transpose(w_fc).astype(jnp.float32)       # [H, O]
    bfc = b_fc.reshape(1, O).astype(jnp.float32)          # [1, O]
    return wih_t, whh_t, b_comb, wfc_t, bfc


@jax.jit
def lstm_forward(x_btd, wih_t, whh_t, b_comb, wfc_t, bfc):
    """x_btd: [B, T, D] (batch_first, like PyTorch). Returns [B, O]."""
    B, T, _ = x_btd.shape
    G = whh_t.shape[1]
    O = wfc_t.shape[1]
    vmem = pl.BlockSpec(memory_space=pltpu.MemorySpace.VMEM)
    return pl.pallas_call(
        lstm_kernel,
        out_shape=jax.ShapeDtypeStruct((B, O), jnp.float32),
        in_specs=[vmem] * 6,
        out_specs=vmem,
        scratch_shapes=[pltpu.VMEM((B, T, G), jnp.float32)],
    )(x_btd.astype(jnp.float32), wih_t, whh_t, b_comb, wfc_t, bfc)


def lstm_reference(x_btd, w_ih, w_hh, b_ih, b_hh, w_fc, b_fc):
    """Pure-JAX reference matching PyTorch nn.LSTM semantics (1 layer, unidir)."""
    B, T, D = x_btd.shape
    H = w_hh.shape[1]
    h = jnp.zeros((B, H), jnp.float32)
    c = jnp.zeros((B, H), jnp.float32)
    for t in range(T):
        gates = x_btd[:, t, :] @ w_ih.T + h @ w_hh.T + b_ih + b_hh
        i_g = jax.nn.sigmoid(gates[:, 0 * H:1 * H])
        f_g = jax.nn.sigmoid(gates[:, 1 * H:2 * H])
        g_g = jnp.tanh(gates[:, 2 * H:3 * H])
        o_g = jax.nn.sigmoid(gates[:, 3 * H:4 * H])
        c = f_g * c + i_g * g_g
        h = o_g * jnp.tanh(c)
    act = jnp.maximum(h, 0.0)
    return act @ w_fc.T + b_fc


if __name__ == "__main__":
    # Small shapes implied by the module: seq=8, input_dim=16, hidden=32, output=4.
    B, T, D, H, O = 2, 8, 16, 32, 4

    key = jax.random.PRNGKey(0)
    ks = jax.random.split(key, 7)
    bound = 1.0 / np.sqrt(H)  # PyTorch default LSTM/Linear init scale

    x = jax.random.normal(ks[0], (B, T, D), jnp.float32)
    w_ih = jax.random.uniform(ks[1], (4 * H, D), jnp.float32, -bound, bound)
    w_hh = jax.random.uniform(ks[2], (4 * H, H), jnp.float32, -bound, bound)
    b_ih = jax.random.uniform(ks[3], (4 * H,), jnp.float32, -bound, bound)
    b_hh = jax.random.uniform(ks[4], (4 * H,), jnp.float32, -bound, bound)
    w_fc = jax.random.uniform(ks[5], (O, H), jnp.float32, -bound, bound)
    b_fc = jax.random.uniform(ks[6], (O,), jnp.float32, -bound, bound)

    packed = pack_params(w_ih, w_hh, b_ih, b_hh, w_fc, b_fc)
    out = lstm_forward(x, *packed)
    out = jax.block_until_ready(out)

    ref = lstm_reference(x, w_ih, w_hh, b_ih, b_hh, w_fc, b_fc)
    np.testing.assert_allclose(np.asarray(out), np.asarray(ref), rtol=2e-5, atol=2e-5)

    print("KERNEL_OK")
</pallas_src>

<mosaic_0001>
module attributes {stable_mosaic.version = 11 : i64} {
  func.func @lstm_kernel(%arg0: memref<2x8x16xf32, #tpu.memory_space<vmem>>, %arg1: memref<16x128xf32, #tpu.memory_space<vmem>>, %arg2: memref<32x128xf32, #tpu.memory_space<vmem>>, %arg3: memref<1x128xf32, #tpu.memory_space<vmem>>, %arg4: memref<32x4xf32, #tpu.memory_space<vmem>>, %arg5: memref<1x4xf32, #tpu.memory_space<vmem>>, %arg6: memref<2x4xf32, #tpu.memory_space<vmem>>, %arg7: memref<2x8x128xf32, #tpu.memory_space<vmem>>) attributes {dimension_semantics = [], scalar_prefetch = 0 : i64, scratch_operands = 1 : i64, tpu.core_type = #tpu.core_type<tc>} {
    %c0 = arith.constant 0 : index
    %c0_0 = arith.constant 0 : index
    %0 = vector.load %arg2[%c0, %c0_0] : memref<32x128xf32, #tpu.memory_space<vmem>>, vector<32x128xf32>
    %c0_1 = arith.constant 0 : index
    %c0_2 = arith.constant 0 : index
    %1 = vector.load %arg3[%c0_1, %c0_2] : memref<1x128xf32, #tpu.memory_space<vmem>>, vector<1x128xf32>
    %c0_3 = arith.constant 0 : index
    %c0_4 = arith.constant 0 : index
    %c0_5 = arith.constant 0 : index
    %2 = vector.load %arg0[%c0_3, %c0_4, %c0_5] : memref<2x8x16xf32, #tpu.memory_space<vmem>>, vector<1x8x16xf32>
    %3 = vector.shape_cast %2 : vector<1x8x16xf32> to vector<8x16xf32>
    %c0_6 = arith.constant 0 : index
    %c0_7 = arith.constant 0 : index
    %4 = vector.load %arg1[%c0_6, %c0_7] : memref<16x128xf32, #tpu.memory_space<vmem>>, vector<16x128xf32>
    %cst = arith.constant dense<0.000000e+00> : vector<8x128xf32>
    %5 = tpu.matmul %3, %4, %cst {dimension_numbers = #tpu.dot_dimension_numbers<[1], [0], [0], [1], [0, 0, 1, 1], [], []>} : vector<8x16xf32>, vector<16x128xf32>, vector<8x128xf32> -> vector<8x128xf32>
    %6 = vector.broadcast %1 : vector<1x128xf32> to vector<8x128xf32>
    %7 = arith.addf %5, %6 : vector<8x128xf32>
    %c0_8 = arith.constant 0 : index
    %c0_9 = arith.constant 0 : index
    %c0_10 = arith.constant 0 : index
    %8 = vector.load %arg7[%c0_8, %c0_9, %c0_10] : memref<2x8x128xf32, #tpu.memory_space<vmem>>, vector<1x8x128xf32>
    %9 = vector.shape_cast %8 : vector<1x8x128xf32> to vector<8x128xf32>
    %10 = vector.shape_cast %7 : vector<8x128xf32> to vector<1x8x128xf32>
    tpu.vector_store %arg7[%c0_8, %c0_9, %c0_10], %10 {strides = array<i32>} : memref<2x8x128xf32, #tpu.memory_space<vmem>>, vector<1x8x128xf32>,
    %c1 = arith.constant 1 : index
    %c0_11 = arith.constant 0 : index
    %c0_12 = arith.constant 0 : index
    %11 = vector.load %arg0[%c1, %c0_11, %c0_12] : memref<2x8x16xf32, #tpu.memory_space<vmem>>, vector<1x8x16xf32>
    %12 = vector.shape_cast %11 : vector<1x8x16xf32> to vector<8x16xf32>
    %c0_13 = arith.constant 0 : index
    %c0_14 = arith.constant 0 : index
    %13 = vector.load %arg1[%c0_13, %c0_14] : memref<16x128xf32, #tpu.memory_space<vmem>>, vector<16x128xf32>
    %cst_15 = arith.constant dense<0.000000e+00> : vector<8x128xf32>
    %14 = tpu.matmul %12, %13, %cst_15 {dimension_numbers = #tpu.dot_dimension_numbers<[1], [0], [0], [1], [0, 0, 1, 1], [], []>} : vector<8x16xf32>, vector<16x128xf32>, vector<8x128xf32> -> vector<8x128xf32>
    %15 = vector.broadcast %1 : vector<1x128xf32> to vector<8x128xf32>
    %16 = arith.addf %14, %15 : vector<8x128xf32>
    %c1_16 = arith.constant 1 : index
    %c0_17 = arith.constant 0 : index
    %c0_18 = arith.constant 0 : index
    %17 = vector.load %arg7[%c1_16, %c0_17, %c0_18] : memref<2x8x128xf32, #tpu.memory_space<vmem>>, vector<1x8x128xf32>
    %18 = vector.shape_cast %17 : vector<1x8x128xf32> to vector<8x128xf32>
    %19 = vector.shape_cast %16 : vector<8x128xf32> to vector<1x8x128xf32>
    tpu.vector_store %arg7[%c1_16, %c0_17, %c0_18], %19 {strides = array<i32>} : memref<2x8x128xf32, #tpu.memory_space<vmem>>, vector<1x8x128xf32>,
    %cst_19 = arith.constant 0.000000e+00 : f32
    %20 = vector.broadcast %cst_19 : f32 to vector<2x32xf32>
    %cst_20 = arith.constant 0.000000e+00 : f32
    %21 = vector.broadcast %cst_20 : f32 to vector<2x128xf32>
    %c0_21 = arith.constant 0 : index
    %c0_22 = arith.constant 0 : index
    %c0_23 = arith.constant 0 : index
    %22 = vector.load %arg7[%c0_21, %c0_22, %c0_23] : memref<2x8x128xf32, #tpu.memory_space<vmem>>, vector<2x1x128xf32>
    %23 = vector.shape_cast %22 : vector<2x1x128xf32> to vector<2x128xf32>
    %cst_24 = arith.constant dense<0.000000e+00> : vector<2x128xf32>
    %24 = tpu.matmul %20, %0, %cst_24 {dimension_numbers = #tpu.dot_dimension_numbers<[1], [0], [0], [1], [0, 0, 1, 1], [], []>} : vector<2x32xf32>, vector<32x128xf32>, vector<2x128xf32> -> vector<2x128xf32>
    %25 = arith.addf %23, %24 : vector<2x128xf32>
    %cst_25 = arith.constant 5.000000e-01 : f32
    %26 = vector.broadcast %cst_25 : f32 to vector<2x128xf32>
    %27 = arith.mulf %26, %25 : vector<2x128xf32>
    %28 = math.tanh %27 : vector<2x128xf32>
    %cst_26 = arith.constant 1.000000e+00 : f32
    %29 = vector.broadcast %cst_26 : f32 to vector<2x128xf32>
    %30 = arith.addf %28, %29 : vector<2x128xf32>
    %cst_27 = arith.constant 5.000000e-01 : f32
    %31 = vector.broadcast %cst_27 : f32 to vector<2x128xf32>
    %32 = arith.mulf %31, %30 : vector<2x128xf32>
    %33 = math.tanh %25 : vector<2x128xf32>
    %c96_i32 = arith.constant 96 : i32
    %34 = tpu.dynamic_rotate %32 by %c96_i32 dim 1 : vector<2x128xf32>, i32 -> vector<2x128xf32>
    %c64_i32 = arith.constant 64 : i32
    %35 = tpu.dynamic_rotate %33 by %c64_i32 dim 1 : vector<2x128xf32>, i32 -> vector<2x128xf32>
    %c32_i32 = arith.constant 32 : i32
    %36 = tpu.dynamic_rotate %32 by %c32_i32 dim 1 : vector<2x128xf32>, i32 -> vector<2x128xf32>
    %37 = arith.mulf %34, %21 : vector<2x128xf32>
    %38 = arith.mulf %32, %35 : vector<2x128xf32>
    %39 = arith.addf %37, %38 : vector<2x128xf32>
    %40 = math.tanh %39 : vector<2x128xf32>
    %41 = arith.mulf %36, %40 : vector<2x128xf32>
    %42 = vector.extract_strided_slice %41 {offsets = [0, 0], sizes = [2, 32], strides = [1, 1]} : vector<2x128xf32> to vector<2x32xf32>
    %c0_28 = arith.constant 0 : index
    %c1_29 = arith.constant 1 : index
    %c0_30 = arith.constant 0 : index
    %43 = vector.load %arg7[%c0_28, %c1_29, %c0_30] : memref<2x8x128xf32, #tpu.memory_space<vmem>>, vector<2x1x128xf32>
    %44 = vector.shape_cast %43 : vector<2x1x128xf32> to vector<2x128xf32>
    %cst_31 = arith.constant dense<0.000000e+00> : vector<2x128xf32>
    %45 = tpu.matmul %42, %0, %cst_31 {dimension_numbers = #tpu.dot_dimension_numbers<[1], [0], [0], [1], [0, 0, 1, 1], [], []>} : vector<2x32xf32>, vector<32x128xf32>, vector<2x128xf32> -> vector<2x128xf32>
    %46 = arith.addf %44, %45 : vector<2x128xf32>
    %cst_32 = arith.constant 5.000000e-01 : f32
    %47 = vector.broadcast %cst_32 : f32 to vector<2x128xf32>
    %48 = arith.mulf %47, %46 : vector<2x128xf32>
    %49 = math.tanh %48 : vector<2x128xf32>
    %cst_33 = arith.constant 1.000000e+00 : f32
    %50 = vector.broadcast %cst_33 : f32 to vector<2x128xf32>
    %51 = arith.addf %49, %50 : vector<2x128xf32>
    %cst_34 = arith.constant 5.000000e-01 : f32
    %52 = vector.broadcast %cst_34 : f32 to vector<2x128xf32>
    %53 = arith.mulf %52, %51 : vector<2x128xf32>
    %54 = math.tanh %46 : vector<2x128xf32>
    %c96_i32_35 = arith.constant 96 : i32
    %55 = tpu.dynamic_rotate %53 by %c96_i32_35 dim 1 : vector<2x128xf32>, i32 -> vector<2x128xf32>
    %c64_i32_36 = arith.constant 64 : i32
    %56 = tpu.dynamic_rotate %54 by %c64_i32_36 dim 1 : vector<2x128xf32>, i32 -> vector<2x128xf32>
    %c32_i32_37 = arith.constant 32 : i32
    %57 = tpu.dynamic_rotate %53 by %c32_i32_37 dim 1 : vector<2x128xf32>, i32 -> vector<2x128xf32>
    %58 = arith.mulf %55, %39 : vector<2x128xf32>
    %59 = arith.mulf %53, %56 : vector<2x128xf32>
    %60 = arith.addf %58, %59 : vector<2x128xf32>
    %61 = math.tanh %60 : vector<2x128xf32>
    %62 = arith.mulf %57, %61 : vector<2x128xf32>
    %63 = vector.extract_strided_slice %62 {offsets = [0, 0], sizes = [2, 32], strides = [1, 1]} : vector<2x128xf32> to vector<2x32xf32>
    %c0_38 = arith.constant 0 : index
    %c2 = arith.constant 2 : index
    %c0_39 = arith.constant 0 : index
    %64 = vector.load %arg7[%c0_38, %c2, %c0_39] : memref<2x8x128xf32, #tpu.memory_space<vmem>>, vector<2x1x128xf32>
    %65 = vector.shape_cast %64 : vector<2x1x128xf32> to vector<2x128xf32>
    %cst_40 = arith.constant dense<0.000000e+00> : vector<2x128xf32>
    %66 = tpu.matmul %63, %0, %cst_40 {dimension_numbers = #tpu.dot_dimension_numbers<[1], [0], [0], [1], [0, 0, 1, 1], [], []>} : vector<2x32xf32>, vector<32x128xf32>, vector<2x128xf32> -> vector<2x128xf32>
    %67 = arith.addf %65, %66 : vector<2x128xf32>
    %cst_41 = arith.constant 5.000000e-01 : f32
    %68 = vector.broadcast %cst_41 : f32 to vector<2x128xf32>
    %69 = arith.mulf %68, %67 : vector<2x128xf32>
    %70 = math.tanh %69 : vector<2x128xf32>
    %cst_42 = arith.constant 1.000000e+00 : f32
    %71 = vector.broadcast %cst_42 : f32 to vector<2x128xf32>
    %72 = arith.addf %70, %71 : vector<2x128xf32>
    %cst_43 = arith.constant 5.000000e-01 : f32
    %73 = vector.broadcast %cst_43 : f32 to vector<2x128xf32>
    %74 = arith.mulf %73, %72 : vector<2x128xf32>
    %75 = math.tanh %67 : vector<2x128xf32>
    %c96_i32_44 = arith.constant 96 : i32
    %76 = tpu.dynamic_rotate %74 by %c96_i32_44 dim 1 : vector<2x128xf32>, i32 -> vector<2x128xf32>
    %c64_i32_45 = arith.constant 64 : i32
    %77 = tpu.dynamic_rotate %75 by %c64_i32_45 dim 1 : vector<2x128xf32>, i32 -> vector<2x128xf32>
    %c32_i32_46 = arith.constant 32 : i32
    %78 = tpu.dynamic_rotate %74 by %c32_i32_46 dim 1 : vector<2x128xf32>, i32 -> vector<2x128xf32>
    %79 = arith.mulf %76, %60 : vector<2x128xf32>
    %80 = arith.mulf %74, %77 : vector<2x128xf32>
    %81 = arith.addf %79, %80 : vector<2x128xf32>
    %82 = math.tanh %81 : vector<2x128xf32>
    %83 = arith.mulf %78, %82 : vector<2x128xf32>
    %84 = vector.extract_strided_slice %83 {offsets = [0, 0], sizes = [2, 32], strides = [1, 1]} : vector<2x128xf32> to vector<2x32xf32>
    %c0_47 = arith.constant 0 : index
    %c3 = arith.constant 3 : index
    %c0_48 = arith.constant 0 : index
    %85 = vector.load %arg7[%c0_47, %c3, %c0_48] : memref<2x8x128xf32, #tpu.memory_space<vmem>>, vector<2x1x128xf32>
    %86 = vector.shape_cast %85 : vector<2x1x128xf32> to vector<2x128xf32>
    %cst_49 = arith.constant dense<0.000000e+00> : vector<2x128xf32>
    %87 = tpu.matmul %84, %0, %cst_49 {dimension_numbers = #tpu.dot_dimension_numbers<[1], [0], [0], [1], [0, 0, 1, 1], [], []>} : vector<2x32xf32>, vector<32x128xf32>, vector<2x128xf32> -> vector<2x128xf32>
    %88 = arith.addf %86, %87 : vector<2x128xf32>
    %cst_50 = arith.constant 5.000000e-01 : f32
    %89 = vector.broadcast %cst_50 : f32 to vector<2x128xf32>
    %90 = arith.mulf %89, %88 : vector<2x128xf32>
    %91 = math.tanh %90 : vector<2x128xf32>
    %cst_51 = arith.constant 1.000000e+00 : f32
    %92 = vector.broadcast %cst_51 : f32 to vector<2x128xf32>
    %93 = arith.addf %91, %92 : vector<2x128xf32>
    %cst_52 = arith.constant 5.000000e-01 : f32
    %94 = vector.broadcast %cst_52 : f32 to vector<2x128xf32>
    %95 = arith.mulf %94, %93 : vector<2x128xf32>
    %96 = math.tanh %88 : vector<2x128xf32>
    %c96_i32_53 = arith.constant 96 : i32
    %97 = tpu.dynamic_rotate %95 by %c96_i32_53 dim 1 : vector<2x128xf32>, i32 -> vector<2x128xf32>
    %c64_i32_54 = arith.constant 64 : i32
    %98 = tpu.dynamic_rotate %96 by %c64_i32_54 dim 1 : vector<2x128xf32>, i32 -> vector<2x128xf32>
    %c32_i32_55 = arith.constant 32 : i32
    %99 = tpu.dynamic_rotate %95 by %c32_i32_55 dim 1 : vector<2x128xf32>, i32 -> vector<2x128xf32>
    %100 = arith.mulf %97, %81 : vector<2x128xf32>
    %101 = arith.mulf %95, %98 : vector<2x128xf32>
    %102 = arith.addf %100, %101 : vector<2x128xf32>
    %103 = math.tanh %102 : vector<2x128xf32>
    %104 = arith.mulf %99, %103 : vector<2x128xf32>
    %105 = vector.extract_strided_slice %104 {offsets = [0, 0], sizes = [2, 32], strides = [1, 1]} : vector<2x128xf32> to vector<2x32xf32>
    %c0_56 = arith.constant 0 : index
    %c4 = arith.constant 4 : index
    %c0_57 = arith.constant 0 : index
    %106 = vector.load %arg7[%c0_56, %c4, %c0_57] : memref<2x8x128xf32, #tpu.memory_space<vmem>>, vector<2x1x128xf32>
    %107 = vector.shape_cast %106 : vector<2x1x128xf32> to vector<2x128xf32>
    %cst_58 = arith.constant dense<0.000000e+00> : vector<2x128xf32>
    %108 = tpu.matmul %105, %0, %cst_58 {dimension_numbers = #tpu.dot_dimension_numbers<[1], [0], [0], [1], [0, 0, 1, 1], [], []>} : vector<2x32xf32>, vector<32x128xf32>, vector<2x128xf32> -> vector<2x128xf32>
    %109 = arith.addf %107, %108 : vector<2x128xf32>
    %cst_59 = arith.constant 5.000000e-01 : f32
    %110 = vector.broadcast %cst_59 : f32 to vector<2x128xf32>
    %111 = arith.mulf %110, %109 : vector<2x128xf32>
    %112 = math.tanh %111 : vector<2x128xf32>
    %cst_60 = arith.constant 1.000000e+00 : f32
    %113 = vector.broadcast %cst_60 : f32 to vector<2x128xf32>
    %114 = arith.addf %112, %113 : vector<2x128xf32>
    %cst_61 = arith.constant 5.000000e-01 : f32
    %115 = vector.broadcast %cst_61 : f32 to vector<2x128xf32>
    %116 = arith.mulf %115, %114 : vector<2x128xf32>
    %117 = math.tanh %109 : vector<2x128xf32>
    %c96_i32_62 = arith.constant 96 : i32
    %118 = tpu.dynamic_rotate %116 by %c96_i32_62 dim 1 : vector<2x128xf32>, i32 -> vector<2x128xf32>
    %c64_i32_63 = arith.constant 64 : i32
    %119 = tpu.dynamic_rotate %117 by %c64_i32_63 dim 1 : vector<2x128xf32>, i32 -> vector<2x128xf32>
    %c32_i32_64 = arith.constant 32 : i32
    %120 = tpu.dynamic_rotate %116 by %c32_i32_64 dim 1 : vector<2x128xf32>, i32 -> vector<2x128xf32>
    %121 = arith.mulf %118, %102 : vector<2x128xf32>
    %122 = arith.mulf %116, %119 : vector<2x128xf32>
    %123 = arith.addf %121, %122 : vector<2x128xf32>
    %124 = math.tanh %123 : vector<2x128xf32>
    %125 = arith.mulf %120, %124 : vector<2x128xf32>
    %126 = vector.extract_strided_slice %125 {offsets = [0, 0], sizes = [2, 32], strides = [1, 1]} : vector<2x128xf32> to vector<2x32xf32>
    %c0_65 = arith.constant 0 : index
    %c5 = arith.constant 5 : index
    %c0_66 = arith.constant 0 : index
    %127 = vector.load %arg7[%c0_65, %c5, %c0_66] : memref<2x8x128xf32, #tpu.memory_space<vmem>>, vector<2x1x128xf32>
    %128 = vector.shape_cast %127 : vector<2x1x128xf32> to vector<2x128xf32>
    %cst_67 = arith.constant dense<0.000000e+00> : vector<2x128xf32>
    %129 = tpu.matmul %126, %0, %cst_67 {dimension_numbers = #tpu.dot_dimension_numbers<[1], [0], [0], [1], [0, 0, 1, 1], [], []>} : vector<2x32xf32>, vector<32x128xf32>, vector<2x128xf32> -> vector<2x128xf32>
    %130 = arith.addf %128, %129 : vector<2x128xf32>
    %cst_68 = arith.constant 5.000000e-01 : f32
    %131 = vector.broadcast %cst_68 : f32 to vector<2x128xf32>
    %132 = arith.mulf %131, %130 : vector<2x128xf32>
    %133 = math.tanh %132 : vector<2x128xf32>
    %cst_69 = arith.constant 1.000000e+00 : f32
    %134 = vector.broadcast %cst_69 : f32 to vector<2x128xf32>
    %135 = arith.addf %133, %134 : vector<2x128xf32>
    %cst_70 = arith.constant 5.000000e-01 : f32
    %136 = vector.broadcast %cst_70 : f32 to vector<2x128xf32>
    %137 = arith.mulf %136, %135 : vector<2x128xf32>
    %138 = math.tanh %130 : vector<2x128xf32>
    %c96_i32_71 = arith.constant 96 : i32
    %139 = tpu.dynamic_rotate %137 by %c96_i32_71 dim 1 : vector<2x128xf32>, i32 -> vector<2x128xf32>
    %c64_i32_72 = arith.constant 64 : i32
    %140 = tpu.dynamic_rotate %138 by %c64_i32_72 dim 1 : vector<2x128xf32>, i32 -> vector<2x128xf32>
    %c32_i32_73 = arith.constant 32 : i32
    %141 = tpu.dynamic_rotate %137 by %c32_i32_73 dim 1 : vector<2x128xf32>, i32 -> vector<2x128xf32>
    %142 = arith.mulf %139, %123 : vector<2x128xf32>
    %143 = arith.mulf %137, %140 : vector<2x128xf32>
    %144 = arith.addf %142, %143 : vector<2x128xf32>
    %145 = math.tanh %144 : vector<2x128xf32>
    %146 = arith.mulf %141, %145 : vector<2x128xf32>
    %147 = vector.extract_strided_slice %146 {offsets = [0, 0], sizes = [2, 32], strides = [1, 1]} : vector<2x128xf32> to vector<2x32xf32>
    %c0_74 = arith.constant 0 : index
    %c6 = arith.constant 6 : index
    %c0_75 = arith.constant 0 : index
    %148 = vector.load %arg7[%c0_74, %c6, %c0_75] : memref<2x8x128xf32, #tpu.memory_space<vmem>>, vector<2x1x128xf32>
    %149 = vector.shape_cast %148 : vector<2x1x128xf32> to vector<2x128xf32>
    %cst_76 = arith.constant dense<0.000000e+00> : vector<2x128xf32>
    %150 = tpu.matmul %147, %0, %cst_76 {dimension_numbers = #tpu.dot_dimension_numbers<[1], [0], [0], [1], [0, 0, 1, 1], [], []>} : vector<2x32xf32>, vector<32x128xf32>, vector<2x128xf32> -> vector<2x128xf32>
    %151 = arith.addf %149, %150 : vector<2x128xf32>
    %cst_77 = arith.constant 5.000000e-01 : f32
    %152 = vector.broadcast %cst_77 : f32 to vector<2x128xf32>
    %153 = arith.mulf %152, %151 : vector<2x128xf32>
    %154 = math.tanh %153 : vector<2x128xf32>
    %cst_78 = arith.constant 1.000000e+00 : f32
    %155 = vector.broadcast %cst_78 : f32 to vector<2x128xf32>
    %156 = arith.addf %154, %155 : vector<2x128xf32>
    %cst_79 = arith.constant 5.000000e-01 : f32
    %157 = vector.broadcast %cst_79 : f32 to vector<2x128xf32>
    %158 = arith.mulf %157, %156 : vector<2x128xf32>
    %159 = math.tanh %151 : vector<2x128xf32>
    %c96_i32_80 = arith.constant 96 : i32
    %160 = tpu.dynamic_rotate %158 by %c96_i32_80 dim 1 : vector<2x128xf32>, i32 -> vector<2x128xf32>
    %c64_i32_81 = arith.constant 64 : i32
    %161 = tpu.dynamic_rotate %159 by %c64_i32_81 dim 1 : vector<2x128xf32>, i32 -> vector<2x128xf32>
    %c32_i32_82 = arith.constant 32 : i32
    %162 = tpu.dynamic_rotate %158 by %c32_i32_82 dim 1 : vector<2x128xf32>, i32 -> vector<2x128xf32>
    %163 = arith.mulf %160, %144 : vector<2x128xf32>
    %164 = arith.mulf %158, %161 : vector<2x128xf32>
    %165 = arith.addf %163, %164 : vector<2x128xf32>
    %166 = math.tanh %165 : vector<2x128xf32>
    %167 = arith.mulf %162, %166 : vector<2x128xf32>
    %168 = vector.extract_strided_slice %167 {offsets = [0, 0], sizes = [2, 32], strides = [1, 1]} : vector<2x128xf32> to vector<2x32xf32>
    %c0_83 = arith.constant 0 : index
    %c7 = arith.constant 7 : index
    %c0_84 = arith.constant 0 : index
    %169 = vector.load %arg7[%c0_83, %c7, %c0_84] : memref<2x8x128xf32, #tpu.memory_space<vmem>>, vector<2x1x128xf32>
    %170 = vector.shape_cast %169 : vector<2x1x128xf32> to vector<2x128xf32>
    %cst_85 = arith.constant dense<0.000000e+00> : vector<2x128xf32>
    %171 = tpu.matmul %168, %0, %cst_85 {dimension_numbers = #tpu.dot_dimension_numbers<[1], [0], [0], [1], [0, 0, 1, 1], [], []>} : vector<2x32xf32>, vector<32x128xf32>, vector<2x128xf32> -> vector<2x128xf32>
    %172 = arith.addf %170, %171 : vector<2x128xf32>
    %cst_86 = arith.constant 5.000000e-01 : f32
    %173 = vector.broadcast %cst_86 : f32 to vector<2x128xf32>
    %174 = arith.mulf %173, %172 : vector<2x128xf32>
    %175 = math.tanh %174 : vector<2x128xf32>
    %cst_87 = arith.constant 1.000000e+00 : f32
    %176 = vector.broadcast %cst_87 : f32 to vector<2x128xf32>
    %177 = arith.addf %175, %176 : vector<2x128xf32>
    %cst_88 = arith.constant 5.000000e-01 : f32
    %178 = vector.broadcast %cst_88 : f32 to vector<2x128xf32>
    %179 = arith.mulf %178, %177 : vector<2x128xf32>
    %180 = math.tanh %172 : vector<2x128xf32>
    %c96_i32_89 = arith.constant 96 : i32
    %181 = tpu.dynamic_rotate %179 by %c96_i32_89 dim 1 : vector<2x128xf32>, i32 -> vector<2x128xf32>
    %c64_i32_90 = arith.constant 64 : i32
    %182 = tpu.dynamic_rotate %180 by %c64_i32_90 dim 1 : vector<2x128xf32>, i32 -> vector<2x128xf32>
    %c32_i32_91 = arith.constant 32 : i32
    %183 = tpu.dynamic_rotate %179 by %c32_i32_91 dim 1 : vector<2x128xf32>, i32 -> vector<2x128xf32>
    %184 = arith.mulf %181, %165 : vector<2x128xf32>
    %185 = arith.mulf %179, %182 : vector<2x128xf32>
    %186 = arith.addf %184, %185 : vector<2x128xf32>
    %187 = math.tanh %186 : vector<2x128xf32>
    %188 = arith.mulf %183, %187 : vector<2x128xf32>
    %189 = vector.extract_strided_slice %188 {offsets = [0, 0], sizes = [2, 32], strides = [1, 1]} : vector<2x128xf32> to vector<2x32xf32>
    %cst_92 = arith.constant 0.000000e+00 : f32
    %190 = vector.broadcast %cst_92 : f32 to vector<2x32xf32>
    %191 = arith.maximumf %189, %190 : vector<2x32xf32>
    %c0_93 = arith.constant 0 : index
    %c0_94 = arith.constant 0 : index
    %192 = vector.load %arg4[%c0_93, %c0_94] : memref<32x4xf32, #tpu.memory_space<vmem>>, vector<32x4xf32>
    %cst_95 = arith.constant dense<0.000000e+00> : vector<2x4xf32>
    %193 = tpu.matmul %191, %192, %cst_95 {dimension_numbers = #tpu.dot_dimension_numbers<[1], [0], [0], [1], [0, 0, 1, 1], [], []>} : vector<2x32xf32>, vector<32x4xf32>, vector<2x4xf32> -> vector<2x4xf32>
    %c0_96 = arith.constant 0 : index
    %c0_97 = arith.constant 0 : index
    %194 = vector.load %arg5[%c0_96, %c0_97] : memref<1x4xf32, #tpu.memory_space<vmem>>, vector<1x4xf32>
    %195 = vector.broadcast %194 : vector<1x4xf32> to vector<2x4xf32>
    %196 = arith.addf %193, %195 : vector<2x4xf32>
    %c0_98 = arith.constant 0 : index
    %c0_99 = arith.constant 0 : index
    %197 = vector.load %arg6[%c0_98, %c0_99] : memref<2x4xf32, #tpu.memory_space<vmem>>, vector<2x4xf32>
    tpu.vector_store %arg6[%c0_98, %c0_99], %196 {strides = array<i32>} : memref<2x4xf32, #tpu.memory_space<vmem>>, vector<2x4xf32>,
    return
  }
}

</mosaic_0001>

<bundles_post_ra>
// kernel: lstm_forward.1
= control target key start
LH: loop header
LB: loop body
LE: loop exit
PB: predicated region body
PF: predicated region fallthrough
CT: control target
= control target key end

     0   :  { %11 = vsyncpa [#allocation4], 0  ;;  %s1069_s0 = inlined_call_operand.hbm [shape: f32[2,8,16], index: 0, kind: input, shape index: {}]   ;;  %s1070_s1 = inlined_call_operand.hbm [shape: f32[16,128], index: 1, kind: input, shape index: {}]   ;;  %s1071_s2 = inlined_call_operand.vmem [shape: f32[32,128], index: 2, kind: input, shape index: {}]   ;;  %s1072_s3 = inlined_call_operand.vmem [shape: f32[1,128], index: 3, kind: input, shape index: {}]   ;;  %s1073_s4 = inlined_call_operand.vmem [shape: f32[32,4], index: 4, kind: input, shape index: {}]   ;;  %s1074_s5 = inlined_call_operand.vmem [shape: f32[1,4], index: 5, kind: input, shape index: {}]   ;;  %s1075_s6 = inlined_call_operand.hbm [shape: f32[2,4], index: 6, kind: output, shape index: {}]  }
   0x1   :  { %12 = vsyncpa [#allocation7], 0 }
   0x2   :  { %13 = vsyncpa [#allocation5], 0  ;;  %s18_s23 = sshll.u32 %s1069_s0, 4  ;;  %s930_s24 = smov [#allocation3]   ;;  %s19_s23 = int_to_ptr.hbm [resolvable:$true] %s18_s23 }
   0x3   :  { %s20_s25 = sshll.u32 %s930_s24, 4  ;;  %s31_s28 = sshll.u32 %s1070_s1, 4  ;;  %s21_s25 = int_to_ptr.vmem [resolvable:$true] %s20_s25  ;;  %s32_s28 = int_to_ptr.hbm [resolvable:$true] %s31_s28 }
   0x4   :  { %s931_s29 = smov 128   ;;  %s932_s30 = smov 8  }
   0x5   :  { %26 = dma.hbm_to_vmem [thread:$0]  %s19_s23, 256, %s21_s25, [#allocation4], %s931_s29, %s931_s29, %s932_s30  }
   0x6   :  { %s933_s7 = smov [#allocation6]  }
   0x7   :  { %s33_s8 = sshll.u32 %s933_s7, 4  ;;  %s34_s8 = int_to_ptr.vmem [resolvable:$true] %s33_s8 }
   0x8   :  { %39 = dma.hbm_to_vmem [thread:$0]  %s32_s28, 256, %s34_s8, [#allocation7], %s931_s29, %s931_s29, %s932_s30  }
   0x9   :  { %924 = dma.done.wait [#allocation4], 256  }
   0xa   :  { %925 = vsyncadd [#allocation4], 4294967040 }
   0xb   :  { %926 = dma.done.wait [#allocation7], 256  }
   0xc   :  { %927 = vsyncadd [#allocation7], 4294967040  ;;  %v63_v0 = vld [vmem:[#allocation6 + $0x8] sm:$0xff]  ;;  %v59_v1 = vld [vmem:[%s1071_s2 + $0x18] sm:$0xff]  ;;  %vm67_vm0 = vcmask 130048   ;;  %v934_v8 = vmov 0.0  }
   0xd   :  { %v62_v2 = vld [vmem:[#allocation6] sm:$0xff]  ;;  %85 = vmatpush.msra.mxu0 %v63_v0  ;;  %139 = vmatpush.msra.mxu2 %v59_v1  ;;  %v58_v3 = vld [vmem:[%s1071_s2 + $0x10] sm:$0xff]  ;;  %v57_v5 = vld [vmem:[%s1071_s2 + $0x8] sm:$0xff]  ;;  %vm166_vm1 = vcmask 1041409   ;;  %s936_s16 = smov 32   ;;  %s937_s17 = smov 96  }
   0xe   :  { %v61_v4 = vld [vmem:[#allocation3] sm:$0xff]  ;;  %113 = vmatpush.msra.mxu1 %v63_v0  ;;  %v93_v6 = vld [vmem:[#allocation3 + $0x8] sm:$0xff]  ;;  %212 = vmatpush.msra.mxu3 %v59_v1  ;;  %v56_v7 = vld [vmem:[%s1071_s2] sm:$0xff]  ;;  %vm123_vm2 = vcmask 261120   ;;  %s938_s27 = smov [#allocation8]   ;;  %s740_s7 = sshll.u32 %s1075_s6, 4  ;;  %s741_s7 = int_to_ptr.hbm [resolvable:$true] %s740_s7 }
   0xf   :  { %86 = vmatpush.msra.mxu0 %v62_v2  ;;  %140 = vmatpush.msra.mxu2 %v58_v3  ;;  %v770_v9 = vld [vmem:[%s1072_s3] ss:$0 sm:$0xff]  ;;  %s935_s3 = smov 64   ;;  %s738_s28 = sshll.u32 %s938_s27, 4  ;;  %vm731_vm3 = vcmask 25600   ;;  %s739_s28 = int_to_ptr.vmem [resolvable:$true] %s738_s28 }
  0x10   :  { %751 = vmatmul.msk.f32.vlgmr.msra.gmra.mxu0 %vm67_vm0, %v61_v4  ;;  %114 = vmatpush.msra.mxu1 %v62_v2 }
  0x11   :  { %141 = vmatpush.msra.mxu2 %v57_v5  ;;  %752 = vmatmul.msk.f32.vlgmr.msra.gmra.mxu1 %vm67_vm0, %v93_v6 }
  0x12   :  { %213 = vmatpush.msra.mxu3 %v58_v3  ;;  %284 = vmatpush.msrb.mxu0 %v59_v1 }
  0x13   :  { %142 = vmatpush.msra.mxu2 %v56_v7  ;;  %356 = vmatpush.msrb.mxu1 %v59_v1 }
  0x14   :  { %143 = vmatmul.f32.vlgmr.msra.gmra.mxu2 %v934_v8  ;;  %214 = vmatpush.msra.mxu3 %v57_v5 }
  0x15   :  { %285 = vmatpush.msrb.mxu0 %v58_v3  ;;  %357 = vmatpush.msrb.mxu1 %v58_v3 }
  0x16   :  { %215 = vmatpush.msra.mxu3 %v56_v7  ;;  %428 = vmatpush.msrb.mxu2 %v59_v1 }
  0x17   :  { %286 = vmatpush.msrb.mxu0 %v57_v5  ;;  %358 = vmatpush.msrb.mxu1 %v57_v5 }
  0x18   :  { %429 = vmatpush.msrb.mxu2 %v58_v3  ;;  %500 = vmatpush.msrb.mxu3 %v59_v1 }
  0x19   :  { %287 = vmatpush.msrb.mxu0 %v56_v7  ;;  %359 = vmatpush.msrb.mxu1 %v56_v7 }
  0x1a   :  { %430 = vmatpush.msrb.mxu2 %v57_v5  ;;  %501 = vmatpush.msrb.mxu3 %v58_v3 }
  0x1b   :  { %572 = vmatpush.msra.mxu0 %v59_v1  ;;  %644 = vmatpush.msra.mxu1 %v59_v1 }
  0x1c   :  { %431 = vmatpush.msrb.mxu2 %v56_v7  ;;  %502 = vmatpush.msrb.mxu3 %v57_v5 }
  0x1d   :  { %573 = vmatpush.msra.mxu0 %v58_v3  ;;  %645 = vmatpush.msra.mxu1 %v58_v3 }
  0x1e   :  { %503 = vmatpush.msrb.mxu3 %v56_v7 }
  0x1f   :  { %574 = vmatpush.msra.mxu0 %v57_v5  ;;  %646 = vmatpush.msra.mxu1 %v57_v5 }
  0x21   :  { %575 = vmatpush.msra.mxu0 %v56_v7  ;;  %647 = vmatpush.msra.mxu1 %v56_v7 }
  0x8d   :  { %v88_v10 = vpop.f32.mrf.mxu0 }
  0x8e   :  { %v89_v11 = vadd.f32 %v770_v9, %v88_v10  ;;  %v116_v12 = vpop.f32.mrf.mxu1 }
  0x8f   :  { %v117_v13 = vadd.f32 %v770_v9, %v116_v12 }
  0x90   :  { %91 = vst [vmem:[#allocation2] sm:$0xff] %v89_v11 }
  0x91   :  { %120 = vst [vmem:[#allocation2 + $0x8] sm:$0xff] %v117_v13 }
  0x97   :  { %v121_v14 = vld [vmem:[#allocation2] sm:$0x1]  ;;  %v144_v15 = vpop.f32.mrf.mxu2  ;;  %v195_v46 = vld [vmem:[#allocation2 + $0x1] sm:$0x1] }
  0x98   :  { %v122_v16 = vld [vmem:[#allocation2 + $0x8] sm:$0x1]  ;;  %v148_v17 = vrot.slane %v144_v15, 1  ;;  %v151_v18 = vadd.f32 %v144_v15, %v121_v14  ;;  %v196_v50 = vld [vmem:[#allocation2 + $0x9] sm:$0x1] }
  0x99   :  { %v267_v14 = vld [vmem:[#allocation2 + $0x2] sm:$0x1] }
  0x9a   :  { %v152_v19 = vadd.f32 %v148_v17, %v122_v16  ;;  %v153_v20 = vmul.f32 0.5, %v151_v18 }
  0x9c   :  { %v154_v21 = vmul.f32 0.5, %v152_v19  ;;  %772 = vtanh.f32 %v153_v20 }
  0x9d   :  { %774 = vtanh.f32 %v152_v19 }
  0x9e   :  { %776 = vtanh.f32 %v154_v21 }
  0x9f   :  { %778 = vtanh.f32 %v151_v18  ;;  %v268_v18 = vld [vmem:[#allocation2 + $0xa] sm:$0x1] }
  0xa2   :  { %v773_v22 = vpop.eup %772 }
  0xa3   :  { %v775_v23 = vpop.eup %774  ;;  %v157_v27 = vadd.f32 1.0, %v773_v22 }
  0xa4   :  { %v777_v24 = vpop.eup %776  ;;  %v173_v25 = vrot.slane %v775_v23, 7 }
  0xa5   :  { %v779_v26 = vpop.eup %778  ;;  %v158_v28 = vadd.f32 1.0, %v777_v24  ;;  %v159_v31 = vmul.f32 0.5, %v157_v27 }
  0xa6   :  { %v174_v29 = vsel %vm166_vm1, %v173_v25, %v779_v26 }
  0xa7   :  { %176 = vrot.lane.b32.xlu0 %v174_v29, %s935_s3  ;;  %v160_v30 = vmul.f32 0.5, %v158_v28 }
  0xa9   :  { %v165_v32 = vrot.slane %v160_v30, 7 }
  0xab   :  { %v167_v33 = vsel %vm166_vm1, %v165_v32, %v159_v31 }
  0xac   :  { %178 = vrot.lane.b32.xlu1 %v167_v33, %s936_s16 }
  0xaf   :  { %169 = vrot.lane.b32.xlu0 %v167_v33, %s937_s17 }
 0x119   :  { %v177_v34 = vpop.permute.xlu0 %176 }
 0x11a   :  { %v182_v35 = vrot.slane %v177_v34, 1  ;;  %v185_v38 = vmul.f32 %v177_v34, %v159_v31 }
 0x11c   :  { %v186_v36 = vmul.f32 %v182_v35, %v160_v30 }
 0x11e   :  { %v189_v37 = vrot.slane %v186_v36, 7  ;;  %v179_v44 = vpop.permute.xlu1 %178 }
 0x120   :  { %v190_v41 = vsel %vm166_vm1, %v189_v37, %v185_v38 }
 0x121   :  { %v170_v39 = vpop.permute.xlu0 %169 }
 0x122   :  { %v180_v40 = vmul.f32 0.0, %v170_v39 }
 0x124   :  { %v192_v42 = vadd.f32 %v190_v41, %v180_v40 }
 0x126   :  { %780 = vtanh.f32 %v192_v42 }
 0x12c   :  { %v781_v43 = vpop.eup %780 }
 0x12d   :  { %v194_v45 = vmul.f32 %v781_v43, %v179_v44 }
 0x12f   :  { %753 = vmatmul.msk.f32.vlgmr.msra.gmra.mxu3 %vm123_vm2, %v194_v45 }
 0x1b2   :  { %v217_v47 = vpop.f32.mrf.mxu3 }
 0x1b3   :  { %v221_v48 = vrot.slane %v217_v47, 1  ;;  %v224_v49 = vadd.f32 %v217_v47, %v195_v46  ;;  %v339_v46 = vld [vmem:[#allocation2 + $0x3] sm:$0x1] }
 0x1b5   :  { %v225_v51 = vadd.f32 %v221_v48, %v196_v50  ;;  %v226_v52 = vmul.f32 0.5, %v224_v49  ;;  %v340_v50 = vld [vmem:[#allocation2 + $0xb] sm:$0x1] }
 0x1b7   :  { %v227_v53 = vmul.f32 0.5, %v225_v51  ;;  %782 = vtanh.f32 %v226_v52 }
 0x1b8   :  { %784 = vtanh.f32 %v225_v51 }
 0x1b9   :  { %786 = vtanh.f32 %v227_v53 }
 0x1ba   :  { %788 = vtanh.f32 %v224_v49 }
 0x1bd   :  { %v783_v54 = vpop.eup %782 }
 0x1be   :  { %v785_v55 = vpop.eup %784  ;;  %v230_v59 = vadd.f32 1.0, %v783_v54 }
 0x1bf   :  { %v787_v56 = vpop.eup %786  ;;  %v245_v57 = vrot.slane %v785_v55, 7 }
 0x1c0   :  { %v789_v58 = vpop.eup %788  ;;  %v231_v60 = vadd.f32 1.0, %v787_v56  ;;  %v232_v63 = vmul.f32 0.5, %v230_v59 }
 0x1c1   :  { %v246_v61 = vsel %vm166_vm1, %v245_v57, %v789_v58 }
 0x1c2   :  { %248 = vrot.lane.b32.xlu1 %v246_v61, %s935_s3  ;;  %v233_v62 = vmul.f32 0.5, %v231_v60 }
 0x1c4   :  { %v238_v0 = vrot.slane %v233_v62, 7 }
 0x1c6   :  { %v239_v1 = vsel %vm166_vm1, %v238_v0, %v232_v63 }
 0x1c7   :  { %241 = vrot.lane.b32.xlu2 %v239_v1, %s937_s17 }
 0x1cf   :  { %250 = vrot.lane.b32.xlu2 %v239_v1, %s936_s16 }
 0x221   :  { %v242_v4 = vpop.permute.xlu2 %241 }
 0x222   :  { %v252_v8 = vmul.f32 %v242_v4, %v192_v42 }
 0x229   :  { %v251_v12 = vpop.permute.xlu2 %250 }
 0x234   :  { %v249_v2 = vpop.permute.xlu1 %248 }
 0x235   :  { %v254_v3 = vrot.slane %v249_v2, 1  ;;  %v257_v6 = vmul.f32 %v249_v2, %v232_v63 }
 0x237   :  { %v258_v5 = vmul.f32 %v254_v3, %v233_v62 }
 0x239   :  { %v261_v7 = vrot.slane %v258_v5, 7 }
 0x23b   :  { %v262_v9 = vsel %vm166_vm1, %v261_v7, %v257_v6 }
 0x23c   :  { %v264_v10 = vadd.f32 %v262_v9, %v252_v8 }
 0x23e   :  { %790 = vtanh.f32 %v264_v10 }
 0x244   :  { %v791_v11 = vpop.eup %790 }
 0x245   :  { %v266_v13 = vmul.f32 %v791_v11, %v251_v12 }
 0x247   :  { %754 = vmatmul.msk.f32.vlgmr.msrb.gmra.mxu0 %vm123_vm2, %v266_v13 }
 0x2c4   :  { %v289_v15 = vpop.f32.mrf.mxu0 }
 0x2c5   :  { %v293_v16 = vrot.slane %v289_v15, 1  ;;  %v296_v17 = vadd.f32 %v289_v15, %v267_v14  ;;  %v411_v14 = vld [vmem:[#allocation2 + $0x4] sm:$0x1] }
 0x2c7   :  { %v297_v19 = vadd.f32 %v293_v16, %v268_v18  ;;  %v298_v20 = vmul.f32 0.5, %v296_v17  ;;  %v412_v18 = vld [vmem:[#allocation2 + $0xc] sm:$0x1] }
 0x2c9   :  { %v299_v21 = vmul.f32 0.5, %v297_v19  ;;  %792 = vtanh.f32 %v298_v20 }
 0x2ca   :  { %794 = vtanh.f32 %v297_v19 }
 0x2cb   :  { %796 = vtanh.f32 %v299_v21 }
 0x2cc   :  { %798 = vtanh.f32 %v296_v17 }
 0x2cf   :  { %v793_v22 = vpop.eup %792 }
 0x2d0   :  { %v795_v23 = vpop.eup %794  ;;  %v302_v27 = vadd.f32 1.0, %v793_v22 }
 0x2d1   :  { %v797_v24 = vpop.eup %796  ;;  %v317_v25 = vrot.slane %v795_v23, 7 }
 0x2d2   :  { %v799_v26 = vpop.eup %798  ;;  %v303_v28 = vadd.f32 1.0, %v797_v24  ;;  %v304_v31 = vmul.f32 0.5, %v302_v27 }
 0x2d3   :  { %v318_v29 = vsel %vm166_vm1, %v317_v25, %v799_v26 }
 0x2d4   :  { %320 = vrot.lane.b32.xlu0 %v318_v29, %s935_s3  ;;  %v305_v30 = vmul.f32 0.5, %v303_v28 }
 0x2d6   :  { %v310_v32 = vrot.slane %v305_v30, 7 }
 0x2d8   :  { %v311_v33 = vsel %vm166_vm1, %v310_v32, %v304_v31 }
 0x2d9   :  { %322 = vrot.lane.b32.xlu2 %v311_v33, %s936_s16  ;;  %313 = vrot.lane.b32.xlu1 %v311_v33, %s937_s17 }
 0x333   :  { %v323_v44 = vpop.permute.xlu2 %322 }
 0x346   :  { %v321_v34 = vpop.permute.xlu0 %320 }
 0x347   :  { %v326_v35 = vrot.slane %v321_v34, 1  ;;  %v329_v37 = vmul.f32 %v321_v34, %v304_v31 }
 0x349   :  { %v330_v36 = vmul.f32 %v326_v35, %v305_v30 }
 0x34b   :  { %v333_v38 = vrot.slane %v330_v36, 7  ;;  %v314_v39 = vpop.permute.xlu1 %313 }
 0x34c   :  { %v324_v40 = vmul.f32 %v314_v39, %v264_v10 }
 0x34d   :  { %v334_v41 = vsel %vm166_vm1, %v333_v38, %v329_v37 }
 0x34e   :  { %v336_v42 = vadd.f32 %v334_v41, %v324_v40 }
 0x350   :  { %800 = vtanh.f32 %v336_v42 }
 0x356   :  { %v801_v43 = vpop.eup %800 }
 0x357   :  { %v338_v45 = vmul.f32 %v801_v43, %v323_v44 }
 0x359   :  { %755 = vmatmul.msk.f32.vlgmr.msrb.gmra.mxu1 %vm123_vm2, %v338_v45 }
 0x3d6   :  { %v361_v47 = vpop.f32.mrf.mxu1 }
 0x3d7   :  { %v365_v48 = vrot.slane %v361_v47, 1  ;;  %v368_v49 = vadd.f32 %v361_v47, %v339_v46  ;;  %v483_v46 = vld [vmem:[#allocation2 + $0x5] sm:$0x1] }
 0x3d9   :  { %v369_v51 = vadd.f32 %v365_v48, %v340_v50  ;;  %v370_v52 = vmul.f32 0.5, %v368_v49  ;;  %v484_v50 = vld [vmem:[#allocation2 + $0xd] sm:$0x1] }
 0x3db   :  { %v371_v53 = vmul.f32 0.5, %v369_v51  ;;  %802 = vtanh.f32 %v370_v52 }
 0x3dc   :  { %804 = vtanh.f32 %v369_v51 }
 0x3dd   :  { %806 = vtanh.f32 %v371_v53 }
 0x3de   :  { %808 = vtanh.f32 %v368_v49 }
 0x3e1   :  { %v803_v54 = vpop.eup %802 }
 0x3e2   :  { %v805_v55 = vpop.eup %804  ;;  %v374_v59 = vadd.f32 1.0, %v803_v54 }
 0x3e3   :  { %v807_v56 = vpop.eup %806  ;;  %v389_v57 = vrot.slane %v805_v55, 7 }
 0x3e4   :  { %v809_v58 = vpop.eup %808  ;;  %v375_v60 = vadd.f32 1.0, %v807_v56  ;;  %v376_v63 = vmul.f32 0.5, %v374_v59 }
 0x3e5   :  { %v390_v61 = vsel %vm166_vm1, %v389_v57, %v809_v58 }
 0x3e6   :  { %392 = vrot.lane.b32.xlu0 %v390_v61, %s935_s3  ;;  %v377_v62 = vmul.f32 0.5, %v375_v60 }
 0x3e8   :  { %v382_v0 = vrot.slane %v377_v62, 7 }
 0x3ea   :  { %v383_v1 = vsel %vm166_vm1, %v382_v0, %v376_v63 }
 0x3eb   :  { %394 = vrot.lane.b32.xlu2 %v383_v1, %s936_s16  ;;  %385 = vrot.lane.b32.xlu1 %v383_v1, %s937_s17 }
 0x445   :  { %v395_v12 = vpop.permute.xlu2 %394 }
 0x458   :  { %v393_v2 = vpop.permute.xlu0 %392 }
 0x459   :  { %v398_v3 = vrot.slane %v393_v2, 1  ;;  %v401_v5 = vmul.f32 %v393_v2, %v376_v63 }
 0x45b   :  { %v402_v4 = vmul.f32 %v398_v3, %v377_v62 }
 0x45d   :  { %v405_v6 = vrot.slane %v402_v4, 7  ;;  %v386_v7 = vpop.permute.xlu1 %385 }
 0x45e   :  { %v396_v8 = vmul.f32 %v386_v7, %v336_v42 }
 0x45f   :  { %v406_v9 = vsel %vm166_vm1, %v405_v6, %v401_v5 }
 0x460   :  { %v408_v10 = vadd.f32 %v406_v9, %v396_v8 }
 0x462   :  { %810 = vtanh.f32 %v408_v10 }
 0x468   :  { %v811_v11 = vpop.eup %810 }
 0x469   :  { %v410_v13 = vmul.f32 %v811_v11, %v395_v12 }
 0x46b   :  { %756 = vmatmul.msk.f32.vlgmr.msrb.gmra.mxu2 %vm123_vm2, %v410_v13 }
 0x4ee   :  { %v433_v15 = vpop.f32.mrf.mxu2 }
 0x4ef   :  { %v437_v16 = vrot.slane %v433_v15, 1  ;;  %v440_v17 = vadd.f32 %v433_v15, %v411_v14  ;;  %v555_v14 = vld [vmem:[#allocation2 + $0x6] sm:$0x1] }
 0x4f1   :  { %v441_v19 = vadd.f32 %v437_v16, %v412_v18  ;;  %v442_v20 = vmul.f32 0.5, %v440_v17  ;;  %v556_v18 = vld [vmem:[#allocation2 + $0xe] sm:$0x1] }
 0x4f3   :  { %v443_v21 = vmul.f32 0.5, %v441_v19  ;;  %812 = vtanh.f32 %v442_v20 }
 0x4f4   :  { %814 = vtanh.f32 %v441_v19 }
 0x4f5   :  { %816 = vtanh.f32 %v443_v21 }
 0x4f6   :  { %818 = vtanh.f32 %v440_v17 }
 0x4f9   :  { %v813_v22 = vpop.eup %812 }
 0x4fa   :  { %v815_v23 = vpop.eup %814  ;;  %v446_v27 = vadd.f32 1.0, %v813_v22 }
 0x4fb   :  { %v817_v24 = vpop.eup %816  ;;  %v461_v25 = vrot.slane %v815_v23, 7 }
 0x4fc   :  { %v819_v26 = vpop.eup %818  ;;  %v447_v28 = vadd.f32 1.0, %v817_v24  ;;  %v448_v31 = vmul.f32 0.5, %v446_v27 }
 0x4fd   :  { %v462_v29 = vsel %vm166_vm1, %v461_v25, %v819_v26 }
 0x4fe   :  { %464 = vrot.lane.b32.xlu0 %v462_v29, %s935_s3  ;;  %v449_v30 = vmul.f32 0.5, %v447_v28 }
 0x500   :  { %v454_v32 = vrot.slane %v449_v30, 7 }
 0x502   :  { %v455_v33 = vsel %vm166_vm1, %v454_v32, %v448_v31 }
 0x503   :  { %466 = vrot.lane.b32.xlu2 %v455_v33, %s936_s16  ;;  %457 = vrot.lane.b32.xlu1 %v455_v33, %s937_s17 }
 0x55d   :  { %v467_v44 = vpop.permute.xlu2 %466 }
 0x570   :  { %v465_v34 = vpop.permute.xlu0 %464 }
 0x571   :  { %v470_v35 = vrot.slane %v465_v34, 1  ;;  %v473_v37 = vmul.f32 %v465_v34, %v448_v31 }
 0x573   :  { %v474_v36 = vmul.f32 %v470_v35, %v449_v30 }
 0x575   :  { %v477_v38 = vrot.slane %v474_v36, 7  ;;  %v458_v39 = vpop.permute.xlu1 %457 }
 0x576   :  { %v468_v40 = vmul.f32 %v458_v39, %v408_v10 }
 0x577   :  { %v478_v41 = vsel %vm166_vm1, %v477_v38, %v473_v37 }
 0x578   :  { %v480_v42 = vadd.f32 %v478_v41, %v468_v40 }
 0x57a   :  { %820 = vtanh.f32 %v480_v42 }
 0x580   :  { %v821_v43 = vpop.eup %820 }
 0x581   :  { %v482_v45 = vmul.f32 %v821_v43, %v467_v44 }
 0x583   :  { %757 = vmatmul.msk.f32.vlgmr.msrb.gmra.mxu3 %vm123_vm2, %v482_v45 }
 0x606   :  { %v505_v47 = vpop.f32.mrf.mxu3 }
 0x607   :  { %v509_v48 = vrot.slane %v505_v47, 1  ;;  %v512_v49 = vadd.f32 %v505_v47, %v483_v46  ;;  %v627_v46 = vld [vmem:[#allocation2 + $0x7] sm:$0x1] }
 0x609   :  { %v513_v51 = vadd.f32 %v509_v48, %v484_v50  ;;  %v514_v52 = vmul.f32 0.5, %v512_v49  ;;  %v628_v50 = vld [vmem:[#allocation2 + $0xf] sm:$0x1] }
 0x60b   :  { %v515_v53 = vmul.f32 0.5, %v513_v51  ;;  %822 = vtanh.f32 %v514_v52 }
 0x60c   :  { %824 = vtanh.f32 %v513_v51 }
 0x60d   :  { %826 = vtanh.f32 %v515_v53 }
 0x60e   :  { %828 = vtanh.f32 %v512_v49 }
 0x611   :  { %v823_v54 = vpop.eup %822 }
 0x612   :  { %v825_v55 = vpop.eup %824  ;;  %v518_v59 = vadd.f32 1.0, %v823_v54 }
 0x613   :  { %v827_v56 = vpop.eup %826  ;;  %v533_v57 = vrot.slane %v825_v55, 7 }
 0x614   :  { %v829_v58 = vpop.eup %828  ;;  %v519_v60 = vadd.f32 1.0, %v827_v56  ;;  %v520_v63 = vmul.f32 0.5, %v518_v59 }
 0x615   :  { %v534_v61 = vsel %vm166_vm1, %v533_v57, %v829_v58 }
 0x616   :  { %v521_v62 = vmul.f32 0.5, %v519_v60  ;;  %536 = vrot.lane.b32.xlu0 %v534_v61, %s935_s3 }
 0x618   :  { %v526_v0 = vrot.slane %v521_v62, 7 }
 0x61a   :  { %v527_v1 = vsel %vm166_vm1, %v526_v0, %v520_v63 }
 0x61b   :  { %538 = vrot.lane.b32.xlu2 %v527_v1, %s936_s16  ;;  %529 = vrot.lane.b32.xlu1 %v527_v1, %s937_s17 }
 0x675   :  { %v539_v12 = vpop.permute.xlu2 %538 }
 0x688   :  { %v537_v2 = vpop.permute.xlu0 %536 }
 0x689   :  { %v542_v3 = vrot.slane %v537_v2, 1  ;;  %v545_v5 = vmul.f32 %v537_v2, %v520_v63  ;;  %v703_v2 = vld [vmem:[%s1073_s4 + $0x18] sm:$0xff] }
 0x68a   :  { %723 = vmatpush.msra.mxu2 %v703_v2 }
 0x68b   :  { %v546_v4 = vmul.f32 %v542_v3, %v521_v62  ;;  %v702_v3 = vld [vmem:[%s1073_s4 + $0x10] sm:$0xff] }
 0x68c   :  { %724 = vmatpush.msra.mxu2 %v702_v3 }
 0x68d   :  { %v549_v6 = vrot.slane %v546_v4, 7  ;;  %v530_v7 = vpop.permute.xlu1 %529  ;;  %v701_v4 = vld [vmem:[%s1073_s4 + $0x8] sm:$0xff] }
 0x68e   :  { %v540_v8 = vmul.f32 %v530_v7, %v480_v42  ;;  %725 = vmatpush.msra.mxu2 %v701_v4 }
 0x68f   :  { %v550_v9 = vsel %vm166_vm1, %v549_v6, %v545_v5  ;;  %v700_v5 = vld [vmem:[%s1073_s4] sm:$0xff] }
 0x690   :  { %v552_v10 = vadd.f32 %v550_v9, %v540_v8  ;;  %726 = vmatpush.msra.mxu2 %v700_v5 }
 0x692   :  { %830 = vtanh.f32 %v552_v10 }
 0x698   :  { %v831_v11 = vpop.eup %830 }
 0x699   :  { %v554_v13 = vmul.f32 %v831_v11, %v539_v12 }
 0x69b   :  { %758 = vmatmul.msk.f32.vlgmr.msra.gmra.mxu0 %vm123_vm2, %v554_v13 }
 0x718   :  { %v577_v15 = vpop.f32.mrf.mxu0 }
 0x719   :  { %v581_v16 = vrot.slane %v577_v15, 1  ;;  %v584_v17 = vadd.f32 %v577_v15, %v555_v14 }
 0x71b   :  { %v585_v19 = vadd.f32 %v581_v16, %v556_v18  ;;  %v586_v20 = vmul.f32 0.5, %v584_v17 }
 0x71d   :  { %v587_v21 = vmul.f32 0.5, %v585_v19  ;;  %832 = vtanh.f32 %v586_v20 }
 0x71e   :  { %834 = vtanh.f32 %v585_v19  ;;  %v771_v19 = vld [vmem:[%s1074_s5] ss:$0 sm:$0xff] }
 0x71f   :  { %836 = vtanh.f32 %v587_v21 }
 0x720   :  { %838 = vtanh.f32 %v584_v17 }
 0x723   :  { %v833_v22 = vpop.eup %832 }
 0x724   :  { %v835_v23 = vpop.eup %834  ;;  %v590_v27 = vadd.f32 1.0, %v833_v22 }
 0x725   :  { %v837_v24 = vpop.eup %836  ;;  %v605_v25 = vrot.slane %v835_v23, 7 }
 0x726   :  { %v839_v26 = vpop.eup %838  ;;  %v591_v28 = vadd.f32 1.0, %v837_v24  ;;  %v592_v31 = vmul.f32 0.5, %v590_v27 }
 0x727   :  { %v606_v29 = vsel %vm166_vm1, %v605_v25, %v839_v26 }
 0x728   :  { %v593_v30 = vmul.f32 0.5, %v591_v28  ;;  %608 = vrot.lane.b32.xlu0 %v606_v29, %s935_s3 }
 0x72a   :  { %v598_v32 = vrot.slane %v593_v30, 7 }
 0x72c   :  { %v599_v33 = vsel %vm166_vm1, %v598_v32, %v592_v31 }
 0x72d   :  { %610 = vrot.lane.b32.xlu2 %v599_v33, %s936_s16  ;;  %601 = vrot.lane.b32.xlu1 %v599_v33, %s937_s17 }
 0x787   :  { %v611_v44 = vpop.permute.xlu2 %610 }
 0x79a   :  { %v609_v34 = vpop.permute.xlu0 %608 }
 0x79b   :  { %v614_v35 = vrot.slane %v609_v34, 1  ;;  %v617_v37 = vmul.f32 %v609_v34, %v592_v31 }
 0x79d   :  { %v618_v36 = vmul.f32 %v614_v35, %v593_v30 }
 0x79f   :  { %v621_v38 = vrot.slane %v618_v36, 7  ;;  %v602_v39 = vpop.permute.xlu1 %601 }
 0x7a0   :  { %v612_v40 = vmul.f32 %v602_v39, %v552_v10 }
 0x7a1   :  { %v622_v41 = vsel %vm166_vm1, %v621_v38, %v617_v37 }
 0x7a2   :  { %v624_v42 = vadd.f32 %v622_v41, %v612_v40 }
 0x7a4   :  { %840 = vtanh.f32 %v624_v42 }
 0x7aa   :  { %v841_v43 = vpop.eup %840 }
 0x7ab   :  { %v626_v45 = vmul.f32 %v841_v43, %v611_v44 }
 0x7ad   :  { %759 = vmatmul.msk.f32.vlgmr.msra.gmra.mxu1 %vm123_vm2, %v626_v45 }
 0x82a   :  { %v649_v47 = vpop.f32.mrf.mxu1 }
 0x82b   :  { %v653_v48 = vrot.slane %v649_v47, 1  ;;  %v656_v49 = vadd.f32 %v649_v47, %v627_v46 }
 0x82d   :  { %v657_v51 = vadd.f32 %v653_v48, %v628_v50  ;;  %v658_v52 = vmul.f32 0.5, %v656_v49 }
 0x82f   :  { %v659_v53 = vmul.f32 0.5, %v657_v51  ;;  %842 = vtanh.f32 %v658_v52 }
 0x830   :  { %844 = vtanh.f32 %v657_v51 }
 0x831   :  { %846 = vtanh.f32 %v659_v53 }
 0x832   :  { %848 = vtanh.f32 %v656_v49 }
 0x835   :  { %v843_v54 = vpop.eup %842 }
 0x836   :  { %v845_v55 = vpop.eup %844  ;;  %v662_v59 = vadd.f32 1.0, %v843_v54 }
 0x837   :  { %v847_v56 = vpop.eup %846  ;;  %v677_v57 = vrot.slane %v845_v55, 7 }
 0x838   :  { %v849_v58 = vpop.eup %848  ;;  %v663_v60 = vadd.f32 1.0, %v847_v56  ;;  %v664_v63 = vmul.f32 0.5, %v662_v59 }
 0x839   :  { %v678_v61 = vsel %vm166_vm1, %v677_v57, %v849_v58 }
 0x83a   :  { %v665_v62 = vmul.f32 0.5, %v663_v60  ;;  %680 = vrot.lane.b32.xlu0 %v678_v61, %s935_s3 }
 0x83c   :  { %v670_v0 = vrot.slane %v665_v62, 7 }
 0x83e   :  { %v671_v1 = vsel %vm166_vm1, %v670_v0, %v664_v63 }
 0x83f   :  { %682 = vrot.lane.b32.xlu2 %v671_v1, %s936_s16  ;;  %673 = vrot.lane.b32.xlu1 %v671_v1, %s937_s17 }
 0x899   :  { %v683_v16 = vpop.permute.xlu2 %682 }
 0x8ac   :  { %v681_v6 = vpop.permute.xlu0 %680 }
 0x8ad   :  { %v686_v7 = vrot.slane %v681_v6, 1  ;;  %v689_v9 = vmul.f32 %v681_v6, %v664_v63 }
 0x8af   :  { %v690_v8 = vmul.f32 %v686_v7, %v665_v62 }
 0x8b1   :  { %v693_v10 = vrot.slane %v690_v8, 7  ;;  %v674_v11 = vpop.permute.xlu1 %673 }
 0x8b2   :  { %v684_v12 = vmul.f32 %v674_v11, %v624_v42 }
 0x8b3   :  { %v694_v13 = vsel %vm166_vm1, %v693_v10, %v689_v9 }
 0x8b4   :  { %v696_v14 = vadd.f32 %v694_v13, %v684_v12 }
 0x8b6   :  { %850 = vtanh.f32 %v696_v14 }
 0x8bc   :  { %v851_v15 = vpop.eup %850 }
 0x8bd   :  { %v698_v17 = vmul.f32 %v851_v15, %v683_v16 }
 0x8bf   :  { %v699_v18 = vmax.f32 %v698_v17, 0.0 }
 0x8c1   :  { %760 = vmatmul.msk.f32.vlgmr.msra.gmra.mxu2 %vm123_vm2, %v699_v18 }
 0x944   :  { %v728_v20 = vpop.f32.mrf.mxu2 }
 0x945   :  { %v729_v21 = vadd.f32 %v771_v19, %v728_v20 }
 0x947   :  { %732 = vst.msk [vmem:[#allocation8] sm:$0x3] %vm731_vm3, %v729_v21 }
 0x948   :  { %743 = dma.vmem_to_hbm [thread:$0]  %s739_s28, 32, %s741_s7, [#allocation5]  }
 0x949   :  { %928 = dma.done.wait [#allocation5], 32  }
 0x94a   :  { %929 = vsyncadd [#allocation5], 4294967264 }
 0x94b   :  { %748 = vsyncpa [#allocation4], 1 }
 0x94c   :  { %749 = vsyncpa [#allocation7], 1 }
 0x94d   :  { %750 = vsyncpa [#allocation5], 1 }

</bundles_post_ra>
